<compile_context>
chip_gen: v6e
topology: v6e:2x2x1
jax: 0.10.0
libtpu: 0.0.40
codegen_flags: <defaults>
</compile_context>

<pallas_src>
import functools

import jax
import jax.numpy as jnp
from jax.experimental import pallas as pl
from jax.experimental.pallas import tpu as pltpu


# ---------------------------------------------------------------------------
# Fused kernel: 1x1 conv+BN+PReLU -> dw3x3+BN+PReLU -> 1x1 conv+BN (+res)
# ---------------------------------------------------------------------------
def _bottleneck_kernel(x_ref, w1d_ref, w2d_ref, vec1_ref, w3d_ref, b3d_ref,
                       o_ref, *, stride, h, w, cin, hid, oup, ho, wo, connect):
    bb = x_ref.shape[0]
    rows = bb * h

    # ---- stage 1: 1x1 conv + BN + PReLU (block-diag weights, lane-dense) --
    x2d = x_ref[...].reshape(rows, w * cin)           # merge leading dims only
    y1 = jnp.dot(x2d, w1d_ref[...], preferred_element_type=jnp.float32)
    vec1 = vec1_ref[...]                              # rows: b1, a1, b2, a2
    y1 = y1 + vec1[0:1]
    y1 = jnp.where(y1 >= 0.0, y1, y1 * vec1[1:2])     # (BB*H, W*hid)

    # ---- stage 2: depthwise 3x3 (pad=1) via XLU rolls + border masks ------
    # Row rolls are done on the flat (BB*H) axis; cross-image rows only ever
    # appear at positions that the border masks zero out anyway.
    r_img = jax.lax.broadcasted_iota(jnp.int32, (rows, w * hid), 0) % h
    lane = jax.lax.broadcasted_iota(jnp.int32, (rows, w * hid), 1)
    m_row = {-1: r_img >= 1, 1: r_img < (h - 1)}
    m_col = {-1: lane >= hid, 1: lane < (w - 1) * hid}

    w2 = w2d_ref[...]                                 # (9, W*hid), s2 folded in
    acc = y1 * w2[4:5]                                # center tap (dy=0, dx=0)
    for kh in range(3):
        for kw in range(3):
            dy, dx = kh - 1, kw - 1
            if dy == 0 and dx == 0:
                continue
            t = y1
            if dy != 0:                               # t[r] = y1[r + dy]
                t = pltpu.roll(t, (-dy) % rows, axis=0)
            if dx != 0:                               # shift one pixel along W
                t = pltpu.roll(t, (-dx * hid) % (w * hid), axis=1)
            if dy == 0:
                mask = m_col[dx]
            elif dx == 0:
                mask = m_row[dy]
            else:
                mask = m_row[dy] & m_col[dx]
            acc = acc + jnp.where(mask, t, 0.0) * w2[kh * 3 + kw:kh * 3 + kw + 1]

    y2 = acc + vec1[2:3]
    y2 = jnp.where(y2 >= 0.0, y2, y2 * vec1[3:4])     # (BB*H, W*hid)

    # ---- stride > 1: keep only every stride-th row of each image ----------
    # (W subsampling is already folded into w3d via a selection matrix.)
    if stride > 1:
        # TODO(synk): stride>1 path implemented but not exercised by the tests
        # below; rows are picked with static slices + concat (no strided value
        # slices).
        y2_3d = y2.reshape(bb, h, w * hid)
        y2 = jnp.concatenate(
            [y2_3d[:, i * stride:i * stride + 1, :] for i in range(ho)],
            axis=1).reshape(bb * ho, w * hid)

    # ---- stage 3: 1x1 conv + BN bias (+ residual; x already in vregs) -----
    y3 = jnp.dot(y2, w3d_ref[...], preferred_element_type=jnp.float32)
    y3 = y3 + b3d_ref[...]
    if connect:
        y3 = y3 + x2d                                 # stride==1, cin==oup
    o_ref[...] = y3.reshape(bb, ho, wo * oup)


# ---------------------------------------------------------------------------
# Wrapper-side operand preparation (BN folding, block-diag weights, tiling)
# ---------------------------------------------------------------------------
def _prepare_operands(p, w, wo, stride):
    b1 = p["b1"].reshape(-1); a1 = p["a1"].reshape(-1)
    b2 = p["b2"].reshape(-1); a2 = p["a2"].reshape(-1)
    b3 = p["b3"].reshape(-1)
    w1_eff = p["w1"] * p["s1"].reshape(1, -1)         # fold BN scales into conv
    w2_eff = p["w2"] * p["s2"].reshape(1, -1)
    w3_eff = p["w3"] * p["s3"].reshape(1, -1)

    eye_w = jnp.eye(w, dtype=jnp.float32)
    w1d = jnp.kron(eye_w, w1_eff)                     # (W*cin, W*hid)
    sel = eye_w[:, ::stride]                          # (W, Wo): col j' <- row j'*stride
    assert sel.shape[1] == wo
    w3d = jnp.kron(sel, w3_eff)                       # (W*hid, Wo*oup)
    w2d = jnp.tile(w2_eff, (1, w))                    # (9, W*hid) lane-dense
    vec1 = jnp.stack([jnp.tile(v, w) for v in (b1, a1, b2, a2)])  # (4, W*hid)
    b3d = jnp.tile(b3, wo)[None, :]                   # (1, Wo*oup)
    return w1d, w2d, vec1, w3d, b3d


def _pick_bb(n, h, w, cin, hid, oup, ho, wo):
    # Rough per-image live f32 bytes in-kernel (input + a few lane-dense slabs).
    per_img = 4 * (h * w * cin + 6 * h * w * hid + ho * wo * oup)
    budget = 6 * 1024 * 1024                          # safe within scoped VMEM on v5e/v6e/v7x
    bb = max(1, min(n, budget // max(per_img, 1)))
    while bb > 1 and n % bb:                          # grid must tile N exactly
        bb -= 1
    if n // bb == 1 and bb % 2 == 0:                  # keep >=2 grid steps (v7x megacore)
        bb //= 2
    return bb


# ---------------------------------------------------------------------------
# Public API: NCHW in / NCHW out (PyTorch convention)
# ---------------------------------------------------------------------------
def bottleneck_forward(x_nchw, p, *, stride, connect):
    n, cin, h, w = x_nchw.shape
    hid = p["w1"].shape[1]
    oup = p["w3"].shape[1]
    if connect:
        assert stride == 1 and cin == oup, "residual path needs stride=1, inp==oup"

    ho = (h + 2 - 3) // stride + 1
    wo = (w + 2 - 3) // stride + 1

    # NCHW -> NHWC -> (N, H, W*Cin): lane-dense last dim (W*Cin = 128 here).
    x = jnp.transpose(x_nchw, (0, 2, 3, 1)).astype(jnp.float32)
    x_flat = x.reshape(n, h, w * cin)

    w1d, w2d, vec1, w3d, b3d = _prepare_operands(p, w, wo, stride)

    bb = _pick_bb(n, h, w, cin, hid, oup, ho, wo)
    grid = (n // bb,)

    kern = functools.partial(
        _bottleneck_kernel, stride=stride, h=h, w=w, cin=cin, hid=hid,
        oup=oup, ho=ho, wo=wo, connect=connect)

    out = pl.pallas_call(
        kern,
        out_shape=jax.ShapeDtypeStruct((n, ho, wo * oup), jnp.float32),
        grid=grid,
        in_specs=[
            pl.BlockSpec((bb, h, w * cin), lambda g: (g, 0, 0)),       # x
            pl.BlockSpec((w * cin, w * hid), lambda g: (0, 0)),        # W1' block-diag
            pl.BlockSpec((9, w * hid), lambda g: (0, 0)),              # dw taps (s2 folded)
            pl.BlockSpec((4, w * hid), lambda g: (0, 0)),              # [b1,a1,b2,a2]
            pl.BlockSpec((w * hid, wo * oup), lambda g: (0, 0)),       # W3' block-diag
            pl.BlockSpec((1, wo * oup), lambda g: (0, 0)),             # b3
        ],
        out_specs=pl.BlockSpec((bb, ho, wo * oup), lambda g: (g, 0, 0)),
        compiler_params=pltpu.CompilerParams(
            dimension_semantics=("parallel",),
            vmem_limit_bytes=32 * 1024 * 1024),        # safe on v5e/v6e/v7x
    )(x_flat, w1d, w2d, vec1, w3d, b3d)

    out = out.reshape(n, ho, wo, oup)
    return jnp.transpose(out, (0, 3, 1, 2))            # back to NCHW


# ---------------------------------------------------------------------------
# Deterministic parameter construction + pure-JAX reference
# ---------------------------------------------------------------------------
def make_params(key, inp, oup, expansion, eps=1e-5):
    hid = inp * expansion
    ks = jax.random.split(key, 17)

    def bn_fold(kg, kb, km, kv, c):
        gamma = 1.0 + 0.1 * jax.random.normal(kg, (c,), jnp.float32)
        beta = 0.1 * jax.random.normal(kb, (c,), jnp.float32)
        mean = 0.1 * jax.random.normal(km, (c,), jnp.float32)
        var = jnp.abs(jax.random.normal(kv, (c,), jnp.float32)) + 0.5
        scale = gamma / jnp.sqrt(var + eps)
        bias = beta - mean * scale
        return scale.reshape(1, c), bias.reshape(1, c)

    p = {}
    p["w1"] = 0.2 * jax.random.normal(ks[0], (inp, hid), jnp.float32)
    p["s1"], p["b1"] = bn_fold(ks[1], ks[2], ks[3], ks[4], hid)
    p["a1"] = (0.25 + 0.05 * jax.random.normal(ks[5], (hid,))).reshape(1, hid)

    p["w2"] = 0.2 * jax.random.normal(ks[6], (9, hid), jnp.float32)
    p["s2"], p["b2"] = bn_fold(ks[7], ks[8], ks[9], ks[10], hid)
    p["a2"] = (0.25 + 0.05 * jax.random.normal(ks[11], (hid,))).reshape(1, hid)

    p["w3"] = 0.2 * jax.random.normal(ks[12], (hid, oup), jnp.float32)
    p["s3"], p["b3"] = bn_fold(ks[13], ks[14], ks[15], ks[16], oup)
    return p


def reference_forward(x_nchw, p, *, stride, connect):
    hid = p["w1"].shape[1]

    def bn(y, s, b):
        return y * s.reshape(1, -1, 1, 1) + b.reshape(1, -1, 1, 1)

    def prelu(y, a):
        a = a.reshape(1, -1, 1, 1)
        return jnp.where(y >= 0, y, y * a)

    dn = ("NCHW", "OIHW", "NCHW")
    w1 = p["w1"].T[:, :, None, None]
    y = jax.lax.conv_general_dilated(x_nchw, w1, (1, 1), "VALID",
                                     dimension_numbers=dn)
    y = prelu(bn(y, p["s1"], p["b1"]), p["a1"])

    w2 = p["w2"].T.reshape(hid, 1, 3, 3)
    y = jax.lax.conv_general_dilated(y, w2, (stride, stride),
                                     ((1, 1), (1, 1)),
                                     dimension_numbers=dn,
                                     feature_group_count=hid)
    y = prelu(bn(y, p["s2"], p["b2"]), p["a2"])

    w3 = p["w3"].T[:, :, None, None]
    y = jax.lax.conv_general_dilated(y, w3, (1, 1), "VALID",
                                     dimension_numbers=dn)
    y = bn(y, p["s3"], p["b3"])
    return x_nchw + y if connect else y


# ---------------------------------------------------------------------------
if __name__ == "__main__":
    key = jax.random.PRNGKey(0)

    # Config 1: residual path (stride=1, inp==oup)   — Bottleneck(8, 8, 1, 2)
    # Config 2: non-residual path (inp != oup)        — Bottleneck(8, 16, 1, 2)
    # Config 3: larger batch exercising batch-blocking (BB>1, even grid).
    configs = [
        dict(N=2, INP=8, OUP=8, H=16, W=16, STRIDE=1, EXPANSION=2),
        dict(N=2, INP=8, OUP=16, H=16, W=16, STRIDE=1, EXPANSION=2),
        dict(N=8, INP=8, OUP=8, H=16, W=16, STRIDE=1, EXPANSION=2),
    ]

    for cfg in configs:
        key, kx, kp = jax.random.split(key, 3)
        connect = (cfg["STRIDE"] == 1 and cfg["INP"] == cfg["OUP"])
        x = jax.random.normal(kx, (cfg["N"], cfg["INP"], cfg["H"], cfg["W"]),
                              jnp.float32)
        params = make_params(kp, cfg["INP"], cfg["OUP"], cfg["EXPANSION"])

        out = bottleneck_forward(x, params, stride=cfg["STRIDE"],
                                 connect=connect)
        out = jax.block_until_ready(out)

        ref = jax.block_until_ready(
            reference_forward(x, params, stride=cfg["STRIDE"],
                              connect=connect))

        ho = (cfg["H"] + 2 - 3) // cfg["STRIDE"] + 1
        wo = (cfg["W"] + 2 - 3) // cfg["STRIDE"] + 1
        assert out.shape == ref.shape == (cfg["N"], cfg["OUP"], ho, wo)
        assert jnp.allclose(out, ref, rtol=1e-4, atol=2e-4), (
            float(jnp.max(jnp.abs(out - ref))))

    print("KERNEL_OK")
</pallas_src>

<mosaic_0001>
module attributes {stable_mosaic.version = 11 : i64} {
  func.func @_bottleneck_kernel(%arg0: i32, %arg1: memref<1x16x128xf32, #tpu.memory_space<vmem>>, %arg2: memref<128x256xf32, #tpu.memory_space<vmem>>, %arg3: memref<9x256xf32, #tpu.memory_space<vmem>>, %arg4: memref<4x256xf32, #tpu.memory_space<vmem>>, %arg5: memref<256x128xf32, #tpu.memory_space<vmem>>, %arg6: memref<1x128xf32, #tpu.memory_space<vmem>>, %arg7: memref<1x16x128xf32, #tpu.memory_space<vmem>>) attributes {dimension_semantics = [#tpu.dimension_semantics<parallel>], iteration_bounds = array<i64: 2>, scalar_prefetch = 0 : i64, scratch_operands = 0 : i64, tpu.core_type = #tpu.core_type<tc>, window_params = [{transform_indices = @transform_0, window_bounds = array<i64: 1, 16, 128>}, {pipeline_mode = #tpu.pipeline_mode<synchronous>, transform_indices = @transform_1, window_bounds = array<i64: 128, 256>}, {pipeline_mode = #tpu.pipeline_mode<synchronous>, transform_indices = @transform_2, window_bounds = array<i64: 9, 256>}, {pipeline_mode = #tpu.pipeline_mode<synchronous>, transform_indices = @transform_3, window_bounds = array<i64: 4, 256>}, {pipeline_mode = #tpu.pipeline_mode<synchronous>, transform_indices = @transform_4, window_bounds = array<i64: 256, 128>}, {pipeline_mode = #tpu.pipeline_mode<synchronous>, transform_indices = @transform_5, window_bounds = array<i64: 1, 128>}, {transform_indices = @transform_6, window_bounds = array<i64: 1, 16, 128>}]} {
    %c0 = arith.constant 0 : index
    %c0_0 = arith.constant 0 : index
    %c0_1 = arith.constant 0 : index
    %0 = vector.load %arg1[%c0, %c0_0, %c0_1] : memref<1x16x128xf32, #tpu.memory_space<vmem>>, vector<1x16x128xf32>
    %1 = vector.shape_cast %0 : vector<1x16x128xf32> to vector<16x128xf32>
    %c0_2 = arith.constant 0 : index
    %c0_3 = arith.constant 0 : index
    %2 = vector.load %arg2[%c0_2, %c0_3] : memref<128x256xf32, #tpu.memory_space<vmem>>, vector<128x256xf32>
    %cst = arith.constant dense<0.000000e+00> : vector<16x256xf32>
    %3 = tpu.matmul %1, %2, %cst {dimension_numbers = #tpu.dot_dimension_numbers<[1], [0], [0], [1], [0, 0, 1, 1], [], []>} : vector<16x128xf32>, vector<128x256xf32>, vector<16x256xf32> -> vector<16x256xf32>
    %c0_4 = arith.constant 0 : index
    %c0_5 = arith.constant 0 : index
    %4 = vector.load %arg4[%c0_4, %c0_5] : memref<4x256xf32, #tpu.memory_space<vmem>>, vector<4x256xf32>
    %5 = vector.extract_strided_slice %4 {offsets = [0, 0], sizes = [1, 256], strides = [1, 1]} : vector<4x256xf32> to vector<1x256xf32>
    %6 = vector.broadcast %5 : vector<1x256xf32> to vector<16x256xf32>
    %7 = arith.addf %3, %6 : vector<16x256xf32>
    %cst_6 = arith.constant 0.000000e+00 : f32
    %8 = vector.broadcast %cst_6 : f32 to vector<16x256xf32>
    %9 = arith.cmpf oge, %7, %8 : vector<16x256xf32>
    %10 = vector.extract_strided_slice %4 {offsets = [1, 0], sizes = [1, 256], strides = [1, 1]} : vector<4x256xf32> to vector<1x256xf32>
    %11 = vector.broadcast %10 : vector<1x256xf32> to vector<16x256xf32>
    %12 = arith.mulf %7, %11 : vector<16x256xf32>
    %13 = arith.select %9, %7, %12 : vector<16x256xi1>, vector<16x256xf32>
    %14 = tpu.iota {dimensions = array<i32: 0>} : vector<16x256xi32>
    %c16_i32 = arith.constant 16 : i32
    %c0_i32 = arith.constant 0 : i32
    %15 = arith.cmpi eq, %c16_i32, %c0_i32 : i32
    %c1_i32 = arith.constant 1 : i32
    %16 = arith.select %15, %c1_i32, %c16_i32 : i32
    %17 = vector.broadcast %16 : i32 to vector<16x256xi32>
    %18 = arith.remsi %14, %17 : vector<16x256xi32>
    %c0_i32_7 = arith.constant 0 : i32
    %19 = vector.broadcast %c0_i32_7 : i32 to vector<16x256xi32>
    %20 = arith.cmpi ne, %18, %19 : vector<16x256xi32>
    %c0_i32_8 = arith.constant 0 : i32
    %21 = vector.broadcast %c0_i32_8 : i32 to vector<16x256xi32>
    %22 = arith.cmpi slt, %18, %21 : vector<16x256xi32>
    %c0_i32_9 = arith.constant 0 : i32
    %23 = arith.cmpi slt, %16, %c0_i32_9 : i32
    %24 = vector.broadcast %23 : i1 to vector<16x256xi1>
    %25 = vector.broadcast %24 : vector<16x256xi1> to vector<16x256xi1>
    %26 = arith.xori %22, %25 : vector<16x256xi1>
    %27 = arith.andi %26, %20 : vector<16x256xi1>
    %28 = vector.broadcast %16 : i32 to vector<16x256xi32>
    %29 = arith.addi %18, %28 : vector<16x256xi32>
    %30 = arith.select %27, %29, %18 : vector<16x256xi1>, vector<16x256xi32>
    %31 = tpu.iota {dimensions = array<i32: 1>} : vector<16x256xi32>
    %c1_i32_10 = arith.constant 1 : i32
    %32 = vector.broadcast %c1_i32_10 : i32 to vector<16x256xi32>
    %33 = arith.cmpi sge, %30, %32 : vector<16x256xi32>
    %c15_i32 = arith.constant 15 : i32
    %34 = vector.broadcast %c15_i32 : i32 to vector<16x256xi32>
    %35 = arith.cmpi slt, %30, %34 : vector<16x256xi32>
    %c16_i32_11 = arith.constant 16 : i32
    %36 = vector.broadcast %c16_i32_11 : i32 to vector<16x256xi32>
    %37 = arith.cmpi sge, %31, %36 : vector<16x256xi32>
    %c240_i32 = arith.constant 240 : i32
    %38 = vector.broadcast %c240_i32 : i32 to vector<16x256xi32>
    %39 = arith.cmpi slt, %31, %38 : vector<16x256xi32>
    %c0_12 = arith.constant 0 : index
    %c0_13 = arith.constant 0 : index
    %40 = vector.load %arg3[%c0_12, %c0_13] : memref<9x256xf32, #tpu.memory_space<vmem>>, vector<9x256xf32>
    %41 = vector.extract_strided_slice %40 {offsets = [4, 0], sizes = [1, 256], strides = [1, 1]} : vector<9x256xf32> to vector<1x256xf32>
    %42 = vector.broadcast %41 : vector<1x256xf32> to vector<16x256xf32>
    %43 = arith.mulf %13, %42 : vector<16x256xf32>
    %c1_i32_14 = arith.constant 1 : i32
    %44 = tpu.dynamic_rotate %13 by %c1_i32_14 dim 0 : vector<16x256xf32>, i32 -> vector<16x256xf32>
    %c16_i32_15 = arith.constant 16 : i32
    %45 = tpu.dynamic_rotate %44 by %c16_i32_15 dim 1 : vector<16x256xf32>, i32 -> vector<16x256xf32>
    %46 = arith.andi %33, %37 : vector<16x256xi1>
    %cst_16 = arith.constant 0.000000e+00 : f32
    %47 = vector.broadcast %cst_16 : f32 to vector<16x256xf32>
    %48 = arith.select %46, %45, %47 : vector<16x256xi1>, vector<16x256xf32>
    %49 = vector.extract_strided_slice %40 {offsets = [0, 0], sizes = [1, 256], strides = [1, 1]} : vector<9x256xf32> to vector<1x256xf32>
    %50 = vector.broadcast %49 : vector<1x256xf32> to vector<16x256xf32>
    %51 = arith.mulf %48, %50 : vector<16x256xf32>
    %52 = arith.addf %43, %51 : vector<16x256xf32>
    %c1_i32_17 = arith.constant 1 : i32
    %53 = tpu.dynamic_rotate %13 by %c1_i32_17 dim 0 : vector<16x256xf32>, i32 -> vector<16x256xf32>
    %cst_18 = arith.constant 0.000000e+00 : f32
    %54 = vector.broadcast %cst_18 : f32 to vector<16x256xf32>
    %55 = arith.select %33, %53, %54 : vector<16x256xi1>, vector<16x256xf32>
    %56 = vector.extract_strided_slice %40 {offsets = [1, 0], sizes = [1, 256], strides = [1, 1]} : vector<9x256xf32> to vector<1x256xf32>
    %57 = vector.broadcast %56 : vector<1x256xf32> to vector<16x256xf32>
    %58 = arith.mulf %55, %57 : vector<16x256xf32>
    %59 = arith.addf %52, %58 : vector<16x256xf32>
    %c1_i32_19 = arith.constant 1 : i32
    %60 = tpu.dynamic_rotate %13 by %c1_i32_19 dim 0 : vector<16x256xf32>, i32 -> vector<16x256xf32>
    %c240_i32_20 = arith.constant 240 : i32
    %61 = tpu.dynamic_rotate %60 by %c240_i32_20 dim 1 : vector<16x256xf32>, i32 -> vector<16x256xf32>
    %62 = arith.andi %33, %39 : vector<16x256xi1>
    %cst_21 = arith.constant 0.000000e+00 : f32
    %63 = vector.broadcast %cst_21 : f32 to vector<16x256xf32>
    %64 = arith.select %62, %61, %63 : vector<16x256xi1>, vector<16x256xf32>
    %65 = vector.extract_strided_slice %40 {offsets = [2, 0], sizes = [1, 256], strides = [1, 1]} : vector<9x256xf32> to vector<1x256xf32>
    %66 = vector.broadcast %65 : vector<1x256xf32> to vector<16x256xf32>
    %67 = arith.mulf %64, %66 : vector<16x256xf32>
    %68 = arith.addf %59, %67 : vector<16x256xf32>
    %c16_i32_22 = arith.constant 16 : i32
    %69 = tpu.dynamic_rotate %13 by %c16_i32_22 dim 1 : vector<16x256xf32>, i32 -> vector<16x256xf32>
    %cst_23 = arith.constant 0.000000e+00 : f32
    %70 = vector.broadcast %cst_23 : f32 to vector<16x256xf32>
    %71 = arith.select %37, %69, %70 : vector<16x256xi1>, vector<16x256xf32>
    %72 = vector.extract_strided_slice %40 {offsets = [3, 0], sizes = [1, 256], strides = [1, 1]} : vector<9x256xf32> to vector<1x256xf32>
    %73 = vector.broadcast %72 : vector<1x256xf32> to vector<16x256xf32>
    %74 = arith.mulf %71, %73 : vector<16x256xf32>
    %75 = arith.addf %68, %74 : vector<16x256xf32>
    %c240_i32_24 = arith.constant 240 : i32
    %76 = tpu.dynamic_rotate %13 by %c240_i32_24 dim 1 : vector<16x256xf32>, i32 -> vector<16x256xf32>
    %cst_25 = arith.constant 0.000000e+00 : f32
    %77 = vector.broadcast %cst_25 : f32 to vector<16x256xf32>
    %78 = arith.select %39, %76, %77 : vector<16x256xi1>, vector<16x256xf32>
    %79 = vector.extract_strided_slice %40 {offsets = [5, 0], sizes = [1, 256], strides = [1, 1]} : vector<9x256xf32> to vector<1x256xf32>
    %80 = vector.broadcast %79 : vector<1x256xf32> to vector<16x256xf32>
    %81 = arith.mulf %78, %80 : vector<16x256xf32>
    %82 = arith.addf %75, %81 : vector<16x256xf32>
    %c15_i32_26 = arith.constant 15 : i32
    %83 = tpu.dynamic_rotate %13 by %c15_i32_26 dim 0 : vector<16x256xf32>, i32 -> vector<16x256xf32>
    %c16_i32_27 = arith.constant 16 : i32
    %84 = tpu.dynamic_rotate %83 by %c16_i32_27 dim 1 : vector<16x256xf32>, i32 -> vector<16x256xf32>
    %85 = arith.andi %35, %37 : vector<16x256xi1>
    %cst_28 = arith.constant 0.000000e+00 : f32
    %86 = vector.broadcast %cst_28 : f32 to vector<16x256xf32>
    %87 = arith.select %85, %84, %86 : vector<16x256xi1>, vector<16x256xf32>
    %88 = vector.extract_strided_slice %40 {offsets = [6, 0], sizes = [1, 256], strides = [1, 1]} : vector<9x256xf32> to vector<1x256xf32>
    %89 = vector.broadcast %88 : vector<1x256xf32> to vector<16x256xf32>
    %90 = arith.mulf %87, %89 : vector<16x256xf32>
    %91 = arith.addf %82, %90 : vector<16x256xf32>
    %c15_i32_29 = arith.constant 15 : i32
    %92 = tpu.dynamic_rotate %13 by %c15_i32_29 dim 0 : vector<16x256xf32>, i32 -> vector<16x256xf32>
    %cst_30 = arith.constant 0.000000e+00 : f32
    %93 = vector.broadcast %cst_30 : f32 to vector<16x256xf32>
    %94 = arith.select %35, %92, %93 : vector<16x256xi1>, vector<16x256xf32>
    %95 = vector.extract_strided_slice %40 {offsets = [7, 0], sizes = [1, 256], strides = [1, 1]} : vector<9x256xf32> to vector<1x256xf32>
    %96 = vector.broadcast %95 : vector<1x256xf32> to vector<16x256xf32>
    %97 = arith.mulf %94, %96 : vector<16x256xf32>
    %98 = arith.addf %91, %97 : vector<16x256xf32>
    %c15_i32_31 = arith.constant 15 : i32
    %99 = tpu.dynamic_rotate %13 by %c15_i32_31 dim 0 : vector<16x256xf32>, i32 -> vector<16x256xf32>
    %c240_i32_32 = arith.constant 240 : i32
    %100 = tpu.dynamic_rotate %99 by %c240_i32_32 dim 1 : vector<16x256xf32>, i32 -> vector<16x256xf32>
    %101 = arith.andi %35, %39 : vector<16x256xi1>
    %cst_33 = arith.constant 0.000000e+00 : f32
    %102 = vector.broadcast %cst_33 : f32 to vector<16x256xf32>
    %103 = arith.select %101, %100, %102 : vector<16x256xi1>, vector<16x256xf32>
    %104 = vector.extract_strided_slice %40 {offsets = [8, 0], sizes = [1, 256], strides = [1, 1]} : vector<9x256xf32> to vector<1x256xf32>
    %105 = vector.broadcast %104 : vector<1x256xf32> to vector<16x256xf32>
    %106 = arith.mulf %103, %105 : vector<16x256xf32>
    %107 = arith.addf %98, %106 : vector<16x256xf32>
    %108 = vector.extract_strided_slice %4 {offsets = [2, 0], sizes = [1, 256], strides = [1, 1]} : vector<4x256xf32> to vector<1x256xf32>
    %109 = vector.broadcast %108 : vector<1x256xf32> to vector<16x256xf32>
    %110 = arith.addf %107, %109 : vector<16x256xf32>
    %cst_34 = arith.constant 0.000000e+00 : f32
    %111 = vector.broadcast %cst_34 : f32 to vector<16x256xf32>
    %112 = arith.cmpf oge, %110, %111 : vector<16x256xf32>
    %113 = vector.extract_strided_slice %4 {offsets = [3, 0], sizes = [1, 256], strides = [1, 1]} : vector<4x256xf32> to vector<1x256xf32>
    %114 = vector.broadcast %113 : vector<1x256xf32> to vector<16x256xf32>
    %115 = arith.mulf %110, %114 : vector<16x256xf32>
    %116 = arith.select %112, %110, %115 : vector<16x256xi1>, vector<16x256xf32>
    %c0_35 = arith.constant 0 : index
    %c0_36 = arith.constant 0 : index
    %117 = vector.load %arg5[%c0_35, %c0_36] : memref<256x128xf32, #tpu.memory_space<vmem>>, vector<256x128xf32>
    %cst_37 = arith.constant dense<0.000000e+00> : vector<16x128xf32>
    %118 = tpu.matmul %116, %117, %cst_37 {dimension_numbers = #tpu.dot_dimension_numbers<[1], [0], [0], [1], [0, 0, 1, 1], [], []>} : vector<16x256xf32>, vector<256x128xf32>, vector<16x128xf32> -> vector<16x128xf32>
    %c0_38 = arith.constant 0 : index
    %c0_39 = arith.constant 0 : index
    %119 = vector.load %arg6[%c0_38, %c0_39] : memref<1x128xf32, #tpu.memory_space<vmem>>, vector<1x128xf32>
    %120 = vector.broadcast %119 : vector<1x128xf32> to vector<16x128xf32>
    %121 = arith.addf %118, %120 : vector<16x128xf32>
    %122 = arith.addf %121, %1 : vector<16x128xf32>
    %123 = vector.shape_cast %122 : vector<16x128xf32> to vector<1x16x128xf32>
    %c0_40 = arith.constant 0 : index
    %c0_41 = arith.constant 0 : index
    %c0_42 = arith.constant 0 : index
    %124 = vector.load %arg7[%c0_40, %c0_41, %c0_42] : memref<1x16x128xf32, #tpu.memory_space<vmem>>, vector<1x16x128xf32>
    tpu.vector_store %arg7[%c0_40, %c0_41, %c0_42], %123 {strides = array<i32>} : memref<1x16x128xf32, #tpu.memory_space<vmem>>, vector<1x16x128xf32>,
    return
  }
  func.func @transform_0(%arg0: i32) -> (i32, i32, i32) {
    %c0_i32 = arith.constant 0 : i32
    %c0_i32_0 = arith.constant 0 : i32
    %c0_i32_1 = arith.constant 0 : i32
    return %arg0, %c0_i32, %c0_i32_0 : i32, i32, i32
  }
  func.func @transform_1(%arg0: i32) -> (i32, i32) {
    %c0_i32 = arith.constant 0 : i32
    %c0_i32_0 = arith.constant 0 : i32
    %c0_i32_1 = arith.constant 0 : i32
    return %c0_i32, %c0_i32_0 : i32, i32
  }
  func.func @transform_2(%arg0: i32) -> (i32, i32) {
    %c0_i32 = arith.constant 0 : i32
    %c0_i32_0 = arith.constant 0 : i32
    %c0_i32_1 = arith.constant 0 : i32
    return %c0_i32, %c0_i32_0 : i32, i32
  }
  func.func @transform_3(%arg0: i32) -> (i32, i32) {
    %c0_i32 = arith.constant 0 : i32
    %c0_i32_0 = arith.constant 0 : i32
    %c0_i32_1 = arith.constant 0 : i32
    return %c0_i32, %c0_i32_0 : i32, i32
  }
  func.func @transform_4(%arg0: i32) -> (i32, i32) {
    %c0_i32 = arith.constant 0 : i32
    %c0_i32_0 = arith.constant 0 : i32
    %c0_i32_1 = arith.constant 0 : i32
    return %c0_i32, %c0_i32_0 : i32, i32
  }
  func.func @transform_5(%arg0: i32) -> (i32, i32) {
    %c0_i32 = arith.constant 0 : i32
    %c0_i32_0 = arith.constant 0 : i32
    %c0_i32_1 = arith.constant 0 : i32
    return %c0_i32, %c0_i32_0 : i32, i32
  }
  func.func @transform_6(%arg0: i32) -> (i32, i32, i32) {
    %c0_i32 = arith.constant 0 : i32
    %c0_i32_0 = arith.constant 0 : i32
    %c0_i32_1 = arith.constant 0 : i32
    return %arg0, %c0_i32, %c0_i32_0 : i32, i32, i32
  }
}

</mosaic_0001>

<bundles_post_ra>
// kernel: tpu_custom_call.1
= control target key start
LH: loop header
LB: loop body
LE: loop exit
PB: predicated region body
PF: predicated region fallthrough
CT: control target
= control target key end

     0   :  { %11 = vsyncpa [#allocation3], 0  ;;  %s2138_s0 = inlined_call_operand.hbm [shape: f32[2,16,128], index: 0, kind: input, shape index: {}]   ;;  %s2139_s1 = inlined_call_operand.hbm [shape: f32[128,256], index: 1, kind: input, shape index: {}]   ;;  %s2140_s2 = inlined_call_operand.hbm [shape: f32[9,256], index: 2, kind: input, shape index: {}]   ;;  %s2141_s3 = inlined_call_operand.hbm [shape: f32[4,256], index: 3, kind: input, shape index: {}]   ;;  %s2142_s4 = inlined_call_operand.hbm [shape: f32[256,128], index: 4, kind: input, shape index: {}]   ;;  %s2143_s5 = inlined_call_operand.vmem [shape: f32[1,128], index: 5, kind: input, shape index: {}]   ;;  %s2144_s6 = inlined_call_operand.hbm [shape: f32[2,16,128], index: 6, kind: output, shape index: {}]  }
   0x1   :  { %13 = vsyncpa [#allocation3 + $0x1], 0 }
   0x2   :  { %14 = vsyncpa [#allocation6], 0 }
   0x3   :  { %15 = vsyncpa [#allocation9], 0 }
   0x4   :  { %16 = vsyncpa [#allocation4], 0 }
   0x5   :  { %18 = vsyncpa [#allocation4 + $0x1], 0  ;;  %s1521_s21 = smov 0   ;;  %s1523_s22 = smov 0  }
   0x6   :  { %s1525_s23 = smov 0   ;;  %s1527_s24 = smov 0  }
   0x7 LB: > { %s1542_s25 = sadd.s32 4294967295, %s1469_s24   ;;  %s1104_s26 = sadd.s32 4294967294, %s1469_s24   ;;  %s1469_s24 = sphi %s1527_s24, %s2184_s24   ;;  %s1465_s23 = sphi %s1525_s23, %s2183_s23   ;;  %s1461_s22 = sphi %s1523_s22, %s2182_s22   ;;  %s1457_s21 = sphi %s1521_s21, %s2181_s21  }
   0x8   : > { %p44_p0 = scmp.ne.s32.totalorder %s1461_s22, %s1457_s21  ;;  %p2145_p1 = scmp.eq.s32.totalorder %s1542_s25, 0 }
   0x9   : > { %p179_p3 = scmp.eq.s32.totalorder %s1104_s26, 1  ;;  %p1105_p5 = scmp.ge.s32.totalorder %s1469_s24, 1 }
   0xa   : > { %p1551_p4 = por %p2145_p1, %p44_p0  ;;  %p186_p7 = scmp.lt.s32.totalorder %s1469_s24, 3 }
   0xb   : > { %p1556_p6 = por %p179_p3, %p44_p0  ;;  %s1471_s30 = smov [#allocation5]  }
   0xc   : > { %s2151_s27 = scalar_select %p1551_p4, 1, 0 }
   0xd   : > { %s2152_s28 = scalar_select %p1556_p6, 1, 0 }
   0xe   : > { %p1561_p8 = pnand %p1105_p5, %p186_p7  ;;  %s198_s7 = sshll.u32 %s1471_s30, 4  ;;  %s199_s7 = int_to_ptr.vmem [resolvable:$true] %s198_s7 }
   0xf   : > { %s1472_s9 = smov [#allocation8]   ;;  %s1473_s11 = smov [#allocation7]  }
  0x10   : > { %s2153_s29 = scalar_select %p1561_p8, 1, 0 }
  0x11   : > { %p1189_p9 = pneg %p1561_p8  ;;  %s225_s10 = sshll.u32 %s1472_s9, 4  ;;  %s226_s10 = int_to_ptr.vmem [resolvable:$true] %s225_s10 }
  0x12   : > { %s211_s12 = sshll.u32 %s1473_s11, 4  ;;  %s1276_s13 = scalar_lea.vmem %s199_s7, 4096  ;;  %s212_s12 = int_to_ptr.vmem [resolvable:$true] %s211_s12 }
  0x13   : > { %p1570_p11 = pnand %p1189_p9, %p2145_p1  ;;  %p1277_p13 = scmp.ne.s32.totalorder %s199_s7, %s1276_s13 }
  0x14   : > { %p1284_p5 = scmp.lt.s32.totalorder %s199_s7, %s199_s7  ;;  %p1285_p7 = scmp.lt.s32.totalorder %s1276_s13, %s1276_s13 }
  0x15   : > { %p1267_p12 = pneg %p1570_p11 }
  0x16   : > { %p1286_p9 = por %p1285_p7, %p1284_p5 }
  0x17   : > { %p1279_p0 = pnand %p1277_p13, %p1267_p12 }
  0x19   : > { %p1280_p3 = pneg %p1279_p0 }
  0x1b   : > { %p1287_p10 = pnand %p1286_p9, %p1280_p3 }
  0x1d   : > { %1290 = shalt.err (!%p1287_p10)
}
  0x1e   : > { %s1474_s14 = smov 256   ;;  %s1475_s15 = smov 16  }
  0x1f   : > { %1192 = dma.hbm_to_vmem [thread:$0]  (!%p1570_p11), %s2139_s1, 4096, %s199_s7, [#allocation6], %s1474_s14, %s1474_s14, %s1475_s15  }
  0x20   : > { %s1302_s18 = scalar_lea.vmem %s226_s10, 128  ;;  %p1310_p2 = scmp.lt.s32.totalorder %s226_s10, %s226_s10 }
  0x21   : > { %p1303_p1 = scmp.ne.s32.totalorder %s226_s10, %s1302_s18  ;;  %p1311_p6 = scmp.lt.s32.totalorder %s1302_s18, %s1302_s18 }
  0x23   : > { %p1305_p13 = pnand %p1303_p1, %p1267_p12  ;;  %p1312_p5 = por %p1311_p6, %p1310_p2 }
  0x25   : > { %p1306_p0 = pneg %p1305_p13 }
  0x27   : > { %p1313_p3 = pnand %p1312_p5, %p1306_p0 }
  0x29   : > { %1316 = shalt.err (!%p1313_p3)
}
  0x2a   : > { %1198 = dma.hbm_to_vmem [thread:$0]  (!%p1570_p11), %s2141_s3, 128, %s226_s10, [#allocation9]  }
  0x2b   : > { %s1328_s26 = scalar_lea.vmem %s212_s12, 512  ;;  %p1336_p9 = scmp.lt.s32.totalorder %s212_s12, %s212_s12 }
  0x2c   : > { %p1329_p10 = scmp.ne.s32.totalorder %s212_s12, %s1328_s26  ;;  %p1337_p13 = scmp.lt.s32.totalorder %s1328_s26, %s1328_s26 }
  0x2e   : > { %p1331_p7 = pnand %p1329_p10, %p1267_p12  ;;  %p1338_p4 = por %p1337_p13, %p1336_p9 }
  0x30   : > { %p1332_p1 = pneg %p1331_p7 }
  0x32   : > { %p1339_p2 = pnand %p1338_p4, %p1332_p1 }
  0x34   : > { %1342 = shalt.err (!%p1339_p2)
}
  0x35   : > { %1195 = dma.hbm_to_vmem [thread:$0]  (!%p1570_p11), %s2140_s2, 512, %s212_s12, [#allocation6], %s1474_s14, %s1474_s14, %s1475_s15  }
  0x36   : > { %s1476_s9 = smov [#allocation10]  }
  0x37   : > { %s235_s10 = sshll.u32 %s1476_s9, 4  ;;  %s236_s10 = int_to_ptr.vmem [resolvable:$true] %s235_s10 }
  0x38   : > { %s1354_s11 = scalar_lea.vmem %s236_s10, 4096  ;;  %p1362_p3 = scmp.lt.s32.totalorder %s236_s10, %s236_s10 }
  0x39   : > { %p1355_p6 = scmp.ne.s32.totalorder %s236_s10, %s1354_s11  ;;  %p1363_p10 = scmp.lt.s32.totalorder %s1354_s11, %s1354_s11 }
  0x3b   : > { %p1357_p0 = pnand %p1355_p6, %p1267_p12  ;;  %p1364_p4 = por %p1363_p10, %p1362_p3 }
  0x3d   : > { %p1358_p5 = pneg %p1357_p0 }
  0x3f   : > { %p1365_p7 = pnand %p1364_p4, %p1358_p5 }
  0x41   : > { %1368 = shalt.err (!%p1365_p7)
}
  0x42   : > { %s2147_s13 = smov 128   ;;  %s2148_s12 = smov 8  }
  0x43   : > { %1201 = dma.hbm_to_vmem [thread:$0]  (!%p1570_p11), %s2142_s4, 4096, %s236_s10, [#allocation9], %s2147_s13, %s2147_s13, %s2148_s12  }
  0x44   : > { %s1612_s16 = sadd.s32 1, %s1469_s24   ;;  %s31_s18 = sadd.s32 1, %s1465_s23 }
  0x45   : > { %s28_s17 = ssub.s32 %s1469_s24, %s1612_s16  ;;  %p38_p1 = scmp.ne.s32.totalorder %s1465_s23, %s1461_s22 }
  0x46   : > { %p29_p12 = scmp.eq.s32.totalorder %s28_s17, 0  ;;  %p39_p9 = scmp.eq.s32.totalorder %s1469_s24, 0 }
  0x47   : > { %p2155_p2 = scmp.eq.s32.totalorder %s1542_s25, 1  ;;  %p1214_p0 = scmp.lt.s32.totalorder %s1469_s24, 2 }
  0x48   : > { %s1621_s19 = scalar_select %p29_p12, %s1465_s23, %s31_s18  }
  0x49   : > { %p40_p13 = por %p39_p9, %p38_p1  ;;  %p1625_p6 = por %p2155_p2, %p38_p1 }
  0x4a   : > { %s252_s20 = sand.u32 1, %s1465_s23   ;;  %s1129_s30 = sshll.u32 %s1469_s24, 8 }
  0x4b   : > { %s2156_s8 = scalar_select %p1625_p6, 1, 0 }
  0x4c   : > { %s1111_s26 = sshll.u32 %s252_s20, 4  ;;  %s1635_s10 = scalar_lea.hbm %s2138_s0, %s1129_s30 }
  0x4d   : > { %s256_s11 = scalar_lea.vmem [#allocation2], %s1111_s26  ;;  %p1639_p11 = pnand %p1214_p0, %p40_p13 }
  0x4e   : > { %s263_s14 = sshll.u32 %s256_s11, 4  ;;  %s1643_s17 = scalar_lea.sflag [#allocation3], %s252_s20  ;;  %s1637_s14 = int_to_ptr.vmem [resolvable:$true] %s263_s14 }
  0x4f   : > { %s1369_s18 = scalar_lea.hbm %s1635_s10, 256  ;;  %p1371_p3 = pneg %p1639_p11 }
  0x50   : > { %p1370_p5 = scmp.ne.s32.totalorder %s1635_s10, %s1369_s18  ;;  %s1374_s26 = scalar_lea.hbm %s2138_s0, 512 }
  0x51   : > { %p1375_p7 = scmp.lt.s32.totalorder %s1635_s10, %s2138_s0  ;;  %p1376_p12 = scmp.lt.s32.totalorder %s1374_s26, %s1369_s18 }
  0x52   : > { %p1372_p10 = pnand %p1371_p3, %p1370_p5 }
  0x53   : > { %p1377_p1 = por %p1376_p12, %p1375_p7 }
  0x54   : > { %p1373_p4 = pneg %p1372_p10 }
  0x56   : > { %p1378_p9 = pnand %p1377_p1, %p1373_p4 }
  0x58   : > { %1381 = shalt.err (!%p1378_p9)
}
  0x59   : > { %s1382_s20 = scalar_lea.vmem %s1637_s14, 256  ;;  %s1479_s13 = smov [#allocation2]  }
  0x5a   : > { %p1383_p13 = scmp.ne.s32.totalorder %s1637_s14, %s1382_s20  ;;  %s1387_s12 = sshll.u32 %s1479_s13, 4  ;;  %s1388_s12 = int_to_ptr.vmem [resolvable:$false] %s1387_s12 }
  0x5b   : > { %s1389_s30 = scalar_lea.vmem %s1388_s12, 512  ;;  %p1390_p5 = scmp.lt.s32.totalorder %s1637_s14, %s1388_s12 }
  0x5c   : > { %p1385_p2 = pnand %p1383_p13, %p1371_p3  ;;  %p1391_p10 = scmp.lt.s32.totalorder %s1389_s30, %s1382_s20 }
  0x5e   : > { %p1386_p0 = pneg %p1385_p2  ;;  %p1392_p6 = por %p1391_p10, %p1390_p5 }
  0x60   : > { %p1393_p8 = pnand %p1392_p6, %p1386_p0 }
  0x62   : > { %1396 = shalt.err (!%p1393_p8)
}
  0x63   : > { %s2158_s18 = smov 8   ;;  %s2159_s7 = smov 128  }
  0x64   : > { %1205 = dma.hbm_to_vmem [thread:$0]  (!%p1639_p11), %s1635_s10, 256, %s1637_s14, %s1643_s17, %s2159_s7, %s2159_s7, %s2158_s18  }
  0x65   : > { %p2160_p3 = scmp.ne.s32.totalorder %s2153_s29, 0 }
  0x66   : > { %s1670_s13 = sand.u32 (!%p2160_p3), 1, %s1461_s22   ;;  %p2161_p8 = scmp.ne.s32.totalorder (!%p2160_p3), %s2151_s27, 0 }
  0x67   : > { %275 = sbr.rel (%p2160_p3) target bundleno = 735 (0x2df), region = 44  ;;  %s1115_s12 = sshll.u32 (!%p2160_p3), %s1670_s13, 4 }
  0x68   : > { %s278_s26 = scalar_lea.sflag (!%p2160_p3), [#allocation3], %s1670_s13  ;;  %s1676_s15 = scalar_lea.vmem (!%p2160_p3), [#allocation2], %s1115_s12 }
  0x6c   : > { %1440 = dma.done.wait (%p2161_p8), %s278_s26, 256  }
  0x6d   : > { %1442 = vsyncadd (%p2161_p8), %s278_s26, 4294967040  ;;  %p2162_p6 = scmp.eq.s32.totalorder %s1542_s25, 0 }
  0x6f   : > { %1444 = dma.done.wait (%p2162_p6), [#allocation6], 4608   ;;  %p2163_p11 = pmov %p2162_p6 }
  0x70   : > { %p2164_p4 = pmov %p2162_p6 }
  0x71   : > { %1446 = vsyncadd (%p2163_p11), [#allocation6], 4294962688 }
  0x72   : > { %1448 = dma.done.wait (%p2164_p4), [#allocation9], 4224   ;;  %p2165_p7 = pmov %p2164_p4 }
  0x73   : > { %v1480_v0 = vmov 0.0   ;;  %v359_v1 = vld [vmem:[#allocation5 + $0xf8] sm:$0xff]  ;;  %v358_v2 = vld [vmem:[#allocation5 + $0xf0] sm:$0xff]  ;;  %v357_v3 = vld [vmem:[#allocation5 + $0xe8] sm:$0xff]  ;;  %v362_v35 = vlaneseq  ;;  %s1481_s27 = smov 16   ;;  %s1482_s29 = smov 112  }
  0x74   : > { %1450 = vsyncadd (%p2165_p7), [#allocation9], 4294963072  ;;  %444 = vmatprep.mubr.f32.mxu0 %v1480_v0  ;;  %380 = vmatprep.subr.mxu0 %v359_v1  ;;  %v356_v4 = vld [vmem:[#allocation5 + $0xe0] sm:$0xff]  ;;  %v355_v5 = vld [vmem:[#allocation5 + $0xd8] sm:$0xff]  ;;  %s325_s17 = scalar_lea.vmem [#allocation11], %s1115_s12  ;;  %s1130_s11 = sshll.u32 %s1542_s25, 8 }
  0x75   : > { %381 = vmatpush1.msra.mxu0 %v358_v2  ;;  %v354_v6 = vld [vmem:[#allocation5 + $0xd0] sm:$0xff]  ;;  %v353_v7 = vld [vmem:[#allocation5 + $0xc8] sm:$0xff]  ;;  %v352_v8 = vld [vmem:[#allocation5 + $0xc0] sm:$0xff]  ;;  %v1701_v36 = vshrl.u32 %v362_v35, 7  ;;  %s993_s9 = sshll.u32 %s325_s17, 4  ;;  %s2094_s18 = scalar_lea.hbm %s2144_s6, %s1130_s11  ;;  %s2089_s9 = int_to_ptr.vmem [resolvable:$true] %s993_s9 }
  0x76   : > { %382 = vmatprep.subr.mxu0 %v357_v3  ;;  %v351_v9 = vld [vmem:[#allocation5 + $0xb8] sm:$0xff]  ;;  %v350_v10 = vld [vmem:[#allocation5 + $0xb0] sm:$0xff]  ;;  %v349_v11 = vld [vmem:[#allocation5 + $0xa8] sm:$0xff]  ;;  %s980_s7 = scalar_lea.sflag [#allocation4], %s1670_s13  ;;  %s1397_s12 = scalar_lea.vmem %s2089_s9, 256 }
  0x77   : > { %383 = vmatpush1.msra.mxu0 %v356_v4  ;;  %v348_v12 = vld [vmem:[#allocation5 + $0xa0] sm:$0xff]  ;;  %v347_v13 = vld [vmem:[#allocation5 + $0x98] sm:$0xff]  ;;  %v346_v14 = vld [vmem:[#allocation5 + $0x90] sm:$0xff]  ;;  %v1704_v37 = vsub.s32 0, %v1701_v36  ;;  %v463_v39 = vsub.s32 1, %v1701_v36  ;;  %v368_v40 = vsub.s32 4, %v1701_v36  ;;  %p1398_p12 = scmp.ne.s32.totalorder %s2089_s9, %s1397_s12 }
  0x78   : > { %384 = vmatprep.subr.mxu0 %v355_v5  ;;  %v345_v15 = vld [vmem:[#allocation5 + $0x88] sm:$0xff]  ;;  %v344_v16 = vld [vmem:[#allocation5 + $0x80] sm:$0xff]  ;;  %v343_v17 = vld [vmem:[#allocation5 + $0x78] sm:$0xff]  ;;  %v1713_v42 = vsub.s32 5, %v1701_v36  ;;  %vm545_vm3 = vcmp.lt.s32.totalorder %v1701_v36, 1  ;;  %vm712_vm6 = vcmp.lt.s32.totalorder %v1701_v36, 7 }
  0x79   : > { %385 = vmatpush1.msra.mxu0 %v354_v6  ;;  %v342_v18 = vld [vmem:[#allocation5 + $0x70] sm:$0xff]  ;;  %v341_v19 = vld [vmem:[#allocation5 + $0x68] sm:$0xff]  ;;  %v340_v20 = vld [vmem:[#allocation5 + $0x60] sm:$0xff]  ;;  %p2178_p1 = scmp.ne.s32.totalorder %s2156_s8, 0  ;;  %s1483_s25 = smov [#allocation11]  }
  0x7a   : > { %386 = vmatprep.subr.mxu0 %v353_v7  ;;  %v339_v21 = vld [vmem:[#allocation5 + $0x58] sm:$0xff]  ;;  %v338_v22 = vld [vmem:[#allocation5 + $0x50] sm:$0xff]  ;;  %v337_v23 = vld [vmem:[#allocation5 + $0x48] sm:$0xff]  ;;  %s1401_s26 = sshll.u32 %s1483_s25, 4  ;;  %s1402_s26 = int_to_ptr.vmem [resolvable:$false] %s1401_s26 }
  0x7b   : > { %387 = vmatpush1.msra.mxu0 %v352_v8  ;;  %v336_v24 = vld [vmem:[#allocation5 + $0x40] sm:$0xff]  ;;  %v335_v25 = vld [vmem:[#allocation5 + $0x38] sm:$0xff]  ;;  %v334_v26 = vld [vmem:[#allocation5 + $0x30] sm:$0xff]  ;;  %p1399_p9 = pnand %p1398_p12, %p2178_p1  ;;  %p1404_p2 = scmp.lt.s32.totalorder %s2089_s9, %s1402_s26 }
  0x7c   : > { %388 = vmatprep.subr.mxu0 %v351_v9  ;;  %v333_v27 = vld [vmem:[#allocation5 + $0x28] sm:$0xff]  ;;  %v332_v28 = vld [vmem:[#allocation5 + $0x20] sm:$0xff]  ;;  %v331_v29 = vld [vmem:[#allocation5 + $0x18] sm:$0xff] }
  0x7d   : > { %389 = vmatpush1.msra.mxu0 %v350_v10  ;;  %v330_v30 = vld [vmem:[#allocation5 + $0x10] sm:$0xff]  ;;  %v329_v31 = vld [vmem:[#allocation5 + $0x8] sm:$0xff]  ;;  %v328_v32 = vld [vmem:[#allocation5] sm:$0xff]  ;;  %p1400_p13 = pneg %p1399_p9 }
  0x7e   : > { %390 = vmatprep.subr.mxu0 %v349_v11  ;;  %v1692_v33 = vld [vmem:[%s1676_s15] sm:$0xff]  ;;  %v1697_v34 = vld [vmem:[%s1676_s15 + $0x8] sm:$0xff]  ;;  %s1403_s15 = scalar_lea.vmem %s1402_s26, 512 }
  0x7f   : > { %391 = vmatpush1.msra.mxu0 %v348_v12  ;;  %v1706_v38 = vld [vmem:[#allocation8] sm:$0xff]  ;;  %v1723_v53 = vld [vmem:[#allocation7 + $0x8] sm:$0xff]  ;;  %p1405_p0 = scmp.lt.s32.totalorder %s1403_s15, %s1397_s12 }
  0x80   : > { %392 = vmatprep.subr.mxu0 %v347_v13  ;;  %v365_v41 = vrot.slane %v1706_v38, %v1704_v37  ;;  %v464_v43 = vrot.slane %v1706_v38, %v463_v39  ;;  %v369_v44 = vrot.slane %v1706_v38, %v368_v40  ;;  %v468_v46 = vrot.slane %v1706_v38, %v1713_v42  ;;  %v1721_v49 = vld [vmem:[#allocation7] sm:$0xff] }
  0x81   : > { %393 = vmatpush1.msra.mxu0 %v346_v14  ;;  %v532_v55 = vrot.slane %v1721_v49, %v368_v40  ;;  %v536_v59 = vrot.slane %v1723_v53, %v368_v40  ;;  %v594_v8 = vrot.slane %v1721_v49, %v463_v39  ;;  %v598_v14 = vrot.slane %v1723_v53, %v463_v39  ;;  %v889_v40 = vld [vmem:[#allocation10 + $0xe0] sm:$0xff]  ;;  %p1406_p5 = por %p1405_p0, %p1404_p2 }
  0x82   : > { %394 = vmatprep.subr.mxu0 %v345_v15  ;;  %v375_v45 = vrot.slane %v365_v41, %v1704_v37  ;;  %v474_v47 = vrot.slane %v464_v43, %v463_v39  ;;  %v379_v48 = vrot.slane %v369_v44, %v1704_v37  ;;  %v478_v52 = vrot.slane %v468_v46, %v463_v39  ;;  %v874_v39 = vld [vmem:[#allocation10 + $0x68] sm:$0xff]  ;;  %v873_v41 = vld [vmem:[#allocation10 + $0x60] sm:$0xff]  ;;  %v888_v43 = vld [vmem:[#allocation10 + $0xd8] sm:$0xff] }
  0x83   : > { %395 = vmatpush1.msra.mxu0 %v344_v16  ;;  %v872_v44 = vld [vmem:[#allocation10 + $0x58] sm:$0xff]  ;;  %v887_v46 = vld [vmem:[#allocation10 + $0xd0] sm:$0xff]  ;;  %p1407_p10 = pnand %p1406_p5, %p1400_p13 }
  0x84   : > { %396 = vmatprep.subr.mxu0 %v343_v17 }
  0x85   : > { %397 = vmatpush1.msra.mxu0 %v342_v18 }
  0x86   : > { %398 = vmatprep.subr.mxu0 %v341_v19 }
  0x87   : > { %399 = vmatpush1.msra.mxu0 %v340_v20 }
  0x88   : > { %400 = vmatprep.subr.mxu0 %v339_v21 }
  0x89   : > { %401 = vmatpush1.msra.mxu0 %v338_v22 }
  0x8a   : > { %402 = vmatprep.subr.mxu0 %v337_v23 }
  0x8b   : > { %403 = vmatpush1.msra.mxu0 %v336_v24 }
  0x8c   : > { %404 = vmatprep.subr.mxu0 %v335_v25 }
  0x8d   : > { %405 = vmatpush1.msra.mxu0 %v334_v26 }
  0x8e   : > { %406 = vmatprep.subr.mxu0 %v333_v27  ;;  %v892_v27 = vld [vmem:[#allocation10 + $0xf8] sm:$0xff] }
  0x8f   : > { %407 = vmatpush1.msra.mxu0 %v332_v28  ;;  %1131 = vmatprep.subr.mxu1 %v892_v27  ;;  %v876_v28 = vld [vmem:[#allocation10 + $0x78] sm:$0xff] }
  0x90   : > { %408 = vmatprep.subr.mxu0 %v331_v29  ;;  %1132 = vmatpush3.msra.mxu1 %v876_v28  ;;  %v891_v29 = vld [vmem:[#allocation10 + $0xf0] sm:$0xff] }
  0x91   : > { %409 = vmatpush1.msra.mxu0 %v330_v30  ;;  %1133 = vmatprep.subr.mxu1 %v891_v29  ;;  %v1846_v29 = vand.u32 127, %v362_v35 }
  0x92   : > { %410 = vmatprep.subr.mxu0 %v329_v31  ;;  %v875_v31 = vld [vmem:[#allocation10 + $0x70] sm:$0xff] }
  0x93   : > { %411 = vmatpush1.msra.mxu0 %v328_v32  ;;  %1134 = vmatpush3.msra.mxu1 %v875_v31  ;;  %v890_v32 = vld [vmem:[#allocation10 + $0xe8] sm:$0xff]  ;;  %v1849_v31 = vsub.s32 7, %v1701_v36  ;;  %vm558_vm8 = vcmp.lt.s32.totalorder %v1846_v29, 16  ;;  %v1862_v35 = vadd.s32 128, %v1846_v29  ;;  %vm521_vm9 = vcmp.ge.s32.totalorder %v1846_v29, 16 }
  0x94   : > { %445 = vmatmul.mubr.f32.vlgmr.msra.gmra.mxu0 %v1692_v33  ;;  %1135 = vmatprep.subr.mxu1 %v890_v32  ;;  %vm615_vm10 = vcmp.lt.s32.totalorder %v1846_v29, 112 }
  0x95   : > { %450 = vmatprep.mubr.f32.mxu0 %v1480_v0  ;;  %v494_v0 = vand.u32 15, %v1701_v36  ;;  %1136 = vmatpush3.msra.mxu1 %v874_v39  ;;  %vm524_vm11 = vcmp.lt.s32.totalorder %v1862_v35, 240 }
  0x96   : > { %1137 = vmatprep.subr.mxu1 %v889_v40 }
  0x97   : > { %vm1748_vm5 = vcmp.ge.s32.totalorder %v494_v0, 1  ;;  %1138 = vmatpush3.msra.mxu1 %v873_v41  ;;  %v866_v0 = vld [vmem:[#allocation10 + $0x28] sm:$0xff]  ;;  %v1857_v41 = vsub.s32 3, %v1701_v36 }
  0x98   : > { %451 = vmatmul.mubr.f32.gmra.mxu0 %v1697_v34  ;;  %1139 = vmatprep.subr.mxu1 %v888_v43  ;;  %v760_v43 = vrot.slane %v1721_v49, %v1849_v31  ;;  %vm1919_vm12 = vmand %vm1748_vm5, %vm524_vm11 }
  0x99   : > { %1140 = vmatpush3.msra.mxu1 %v872_v44  ;;  %vm1939_vm13 = vmand %vm1748_vm5, %vm521_vm9 }
  0x9a   : > { %1141 = vmatprep.subr.mxu1 %v887_v46 }
 0x154   : > { %v446_v50 = vpop.f32.mrf.mxu0 }
 0x155   : > { %v447_v51 = vadd.f32 %v446_v50, %v375_v45  ;;  %v886_v50 = vld [vmem:[#allocation10 + $0xc8] sm:$0xff] }
 0x156   : > { %v448_v54 = vpop.f32.mrf.mxu0 }
 0x157   : > { %vm457_vm0 = vcmp.ge.f32.partialorder %v447_v51, 0.0  ;;  %v479_v56 = vmul.f32 %v474_v47, %v447_v51  ;;  %v449_v57 = vadd.f32 %v448_v54, %v379_v48  ;;  %v885_v54 = vld [vmem:[#allocation10 + $0xc0] sm:$0xff] }
 0x158   : > { %v452_v58 = vpop.f32.mrf.mxu0 }
 0x159   : > { %v1727_v60 = vsel %vm457_vm0, %v447_v51, %v479_v56  ;;  %vm458_vm1 = vcmp.ge.f32.partialorder %v449_v57, 0.0  ;;  %v480_v61 = vmul.f32 %v478_v52, %v449_v57  ;;  %v453_v62 = vadd.f32 %v452_v58, %v375_v45  ;;  %v868_v58 = vld [vmem:[#allocation10 + $0x38] sm:$0xff] }
 0x15a   : > { %v454_v63 = vpop.f32.mrf.mxu0  ;;  %644 = vrot.lane.b32.xlu0 %v1727_v60, %s1481_s27  ;;  %v1733_v1 = vmul.f32 %v532_v55, %v1727_v60  ;;  %v541_v10 = vrot.slane %v1727_v60, 7 }
 0x15b   : > { %v1735_v2 = vsel %vm458_vm1, %v449_v57, %v480_v61  ;;  %vm459_vm2 = vcmp.ge.f32.partialorder %v453_v62, 0.0  ;;  %v481_v3 = vmul.f32 %v474_v47, %v453_v62  ;;  %v455_v4 = vadd.f32 %v454_v63, %v379_v48  ;;  %v871_v48 = vld [vmem:[#allocation10 + $0x50] sm:$0xff]  ;;  %v884_v57 = vld [vmem:[#allocation10 + $0xb8] sm:$0xff]  ;;  %v882_v63 = vld [vmem:[#allocation10 + $0xa8] sm:$0xff] }
 0x15c   : > { %648 = vrot.lane.b32.xlu1 %v1735_v2, %s1481_s27  ;;  %v1741_v5 = vmul.f32 %v536_v59, %v1735_v2  ;;  %v542_v17 = vrot.slane %v1735_v2, 7  ;;  %v708_v47 = vrot.slane %v1727_v60, 1  ;;  %1142 = vmatpush3.msra.mxu1 %v871_v48  ;;  %v867_v61 = vld [vmem:[#allocation10 + $0x30] sm:$0xff] }
 0x15d   : > { %v1743_v6 = vsel %vm459_vm2, %v453_v62, %v481_v3  ;;  %vm460_vm4 = vcmp.ge.f32.partialorder %v455_v4, 0.0  ;;  %v482_v7 = vmul.f32 %v478_v52, %v455_v4  ;;  %1143 = vmatprep.subr.mxu1 %v886_v50  ;;  %v870_v52 = vld [vmem:[#allocation10 + $0x48] sm:$0xff]  ;;  %v881_v3 = vld [vmem:[#allocation10 + $0xa0] sm:$0xff]  ;;  %v1876_v50 = vsub.s32 2, %v1701_v36 }
 0x15e   : > { %676 = vrot.lane.b32.xlu0 %v1727_v60, %s1482_s29  ;;  %v543_v11 = vrot.slane %v1743_v6, 7  ;;  %v1755_v12 = vmul.f32 %v532_v55, %v1743_v6  ;;  %v710_v45 = vrot.slane %v1743_v6, 1  ;;  %1144 = vmatpush3.msra.mxu1 %v870_v52  ;;  %v869_v55 = vld [vmem:[#allocation10 + $0x40] sm:$0xff]  ;;  %v709_v60 = vrot.slane %v1735_v2, 1 }
 0x15f   : > { %v1757_v13 = vsel %vm460_vm4, %v455_v4, %v482_v7  ;;  %1145 = vmatprep.subr.mxu1 %v885_v54  ;;  %v865_v4 = vld [vmem:[#allocation10 + $0x20] sm:$0xff]  ;;  %v880_v7 = vld [vmem:[#allocation10 + $0x98] sm:$0xff]  ;;  %v1883_v54 = vrot.slane %v1721_v49, %v1857_v41 }
 0x160   : > { %680 = vrot.lane.b32.xlu1 %v1735_v2, %s1482_s29  ;;  %v548_v15 = vsel %vm545_vm3, %v543_v11, %v541_v10  ;;  %v546_v16 = vsel %vm545_vm3, %v541_v10, %v543_v11  ;;  %v544_v18 = vrot.slane %v1757_v13, 7  ;;  %v1790_v30 = vmul.f32 %v536_v59, %v1757_v13  ;;  %1146 = vmatpush3.msra.mxu1 %v869_v55  ;;  %v883_v59 = vld [vmem:[#allocation10 + $0xb0] sm:$0xff] }
 0x161   : > { %v587_v19 = vsel %vm1748_vm5, %v548_v15, 0.0  ;;  %v1770_v20 = vmul.f32 %v594_v8, %v546_v16  ;;  %v1805_v51 = vsel %vm712_vm6, %v708_v47, %v710_v45  ;;  %v711_v56 = vrot.slane %v1757_v13, 1  ;;  %1147 = vmatprep.subr.mxu1 %v884_v57  ;;  %v879_v10 = vld [vmem:[#allocation10 + $0x90] sm:$0xff] }
 0x162   : > { %646 = vrot.lane.b32.xlu0 %v1743_v6, %s1481_s27  ;;  %v1774_v21 = vmul.f32 %v594_v8, %v587_v19  ;;  %v549_v22 = vsel %vm545_vm3, %v544_v18, %v542_v17  ;;  %v547_v23 = vsel %vm545_vm3, %v542_v17, %v544_v18  ;;  %1148 = vmatpush3.msra.mxu1 %v868_v58  ;;  %v864_v8 = vld [vmem:[#allocation10 + $0x18] sm:$0xff]  ;;  %v863_v11 = vld [vmem:[#allocation10 + $0x10] sm:$0xff] }
 0x163   : > { %v588_v24 = vsel %vm1748_vm5, %v549_v22, 0.0  ;;  %v1782_v25 = vmul.f32 %v598_v14, %v547_v23  ;;  %v1816_v62 = vsel %vm712_vm6, %v709_v60, %v711_v56  ;;  %1149 = vmatprep.subr.mxu1 %v883_v59  ;;  %v1822_v2 = vsel %vm712_vm6, %v710_v45, %v708_v47 }
 0x164   : > { %650 = vrot.lane.b32.xlu1 %v1757_v13, %s1481_s27  ;;  %v1786_v26 = vmul.f32 %v598_v14, %v588_v24  ;;  %1150 = vmatpush3.msra.mxu1 %v867_v61  ;;  %v862_v14 = vld [vmem:[#allocation10 + $0x8] sm:$0xff]  ;;  %v764_v45 = vrot.slane %v1723_v53, %v1849_v31  ;;  %v1887_v55 = vrot.slane %v1723_v53, %v1857_v41 }
 0x165   : > { %1151 = vmatprep.subr.mxu1 %v882_v63  ;;  %v1893_v57 = vmul.f32 %v760_v43, %v1805_v51  ;;  %v1898_v58 = vrot.slane %v1721_v49, %v1713_v42  ;;  %v1902_v59 = vrot.slane %v1723_v53, %v1713_v42 }
 0x166   : > { %550 = vrot.lane.b32.xlu0 %v548_v15, %s1481_s27  ;;  %1152 = vmatpush3.msra.mxu1 %v866_v0  ;;  %v1905_v61 = vmul.f32 %v764_v45, %v1816_v62 }
 0x167   : > { %1153 = vmatprep.subr.mxu1 %v881_v3 }
 0x168   : > { %607 = vrot.lane.b32.xlu1 %v548_v15, %s1482_s29  ;;  %1154 = vmatpush3.msra.mxu1 %v865_v4  ;;  %v877_v15 = vld [vmem:[#allocation10 + $0x80] sm:$0xff]  ;;  %v578_v4 = vrot.slane %v1723_v53, %v1704_v37 }
 0x169   : > { %1155 = vmatprep.subr.mxu1 %v880_v7 }
 0x16a   : > { %552 = vrot.lane.b32.xlu0 %v546_v16, %s1481_s27  ;;  %1156 = vmatpush3.msra.mxu1 %v864_v8 }
 0x16b   : > { %1157 = vmatprep.subr.mxu1 %v879_v10 }
 0x16c   : > { %682 = vrot.lane.b32.xlu1 %v1757_v13, %s1482_s29  ;;  %v878_v13 = vld [vmem:[#allocation10 + $0x88] sm:$0xff]  ;;  %1158 = vmatpush3.msra.mxu1 %v863_v11 }
 0x16d   : > { %1159 = vmatprep.subr.mxu1 %v878_v13 }
 0x16e   : > { %609 = vrot.lane.b32.xlu0 %v546_v16, %s1482_s29  ;;  %v861_v16 = vld [vmem:[#allocation10] sm:$0xff]  ;;  %1160 = vmatpush3.msra.mxu1 %v862_v14 }
 0x16f   : > { %1161 = vmatprep.subr.mxu1 %v877_v15 }
 0x170   : > { %611 = vrot.lane.b32.xlu1 %v549_v22, %s1482_s29  ;;  %1162 = vmatpush3.msra.mxu1 %v861_v16  ;;  %v812_v16 = vrot.slane %v1706_v38, %v1876_v50 }
 0x172   : > { %554 = vrot.lane.b32.xlu0 %v549_v22, %s1481_s27 }
 0x174   : > { %556 = vrot.lane.b32.xlu1 %v547_v23, %s1481_s27 }
 0x176   : > { %717 = vrot.lane.b32.xlu0 %v1805_v51, %s1481_s27 }
 0x178   : > { %613 = vrot.lane.b32.xlu1 %v547_v23, %s1482_s29  ;;  %v489_v23 = vadd.s32 8, %v1701_v36 }
 0x17a   : > { %678 = vrot.lane.b32.xlu0 %v1743_v6, %s1482_s29  ;;  %v1828_v6 = vsel %vm712_vm6, %v711_v56, %v709_v60  ;;  %v501_v28 = vand.u32 15, %v489_v23  ;;  %v1890_v56 = vsub.s32 6, %v1701_v36 }
 0x17c   : > { %721 = vrot.lane.b32.xlu1 %v1816_v62, %s1481_s27  ;;  %vm1851_vm7 = vcmp.lt.s32.totalorder %v501_v28, 15  ;;  %v1951_v15 = vrot.slane %v1723_v53, %v1890_v56 }
 0x17d   : > { %v755_v46 = vsel %vm1851_vm7, %v1822_v2, 0.0  ;;  %v756_v52 = vsel %vm1851_vm7, %v1828_v6, 0.0  ;;  %vm2024_vm14 = vmand %vm1851_vm7, %vm521_vm9 }
 0x17e   : > { %719 = vrot.lane.b32.xlu0 %v1822_v2, %s1481_s27  ;;  %v1907_v63 = vmul.f32 %v760_v43, %v755_v46  ;;  %v1913_v0 = vmul.f32 %v764_v45, %v756_v52  ;;  %vm2065_vm15 = vmand %vm1851_vm7, %vm524_vm11 }
 0x180   : > { %723 = vrot.lane.b32.xlu1 %v1828_v6, %s1481_s27 }
 0x182   : > { %773 = vrot.lane.b32.xlu0 %v1805_v51, %s1482_s29 }
 0x184   : > { %777 = vrot.lane.b32.xlu1 %v1816_v62, %s1482_s29  ;;  %v631_v62 = vrot.slane %v1721_v49, %v1876_v50 }
 0x186   : > { %775 = vrot.lane.b32.xlu0 %v1822_v2, %s1482_s29  ;;  %v574_v2 = vrot.slane %v1721_v49, %v1704_v37  ;;  %v1945_v37 = vrot.slane %v1721_v49, %v1890_v56 }
 0x188   : > { %779 = vrot.lane.b32.xlu1 %v1828_v6, %s1482_s29  ;;  %v635_v6 = vrot.slane %v1723_v53, %v1876_v50 }
 0x1cc   : > { %v645_v17 = vpop.permute.xlu0 %644 }
 0x1ce   : > { %v649_v18 = vpop.permute.xlu1 %648 }
 0x1cf   : > { %v654_v47 = vsel %vm558_vm8, %v649_v18, %v645_v17  ;;  %v652_v36 = vsel %vm558_vm8, %v645_v17, %v649_v18 }
 0x1d0   : > { %v677_v19 = vpop.permute.xlu0 %676  ;;  %v656_v51 = vsel %vm521_vm9, %v654_v47, 0.0  ;;  %v669_v13 = vmul.f32 %v1887_v55, %v652_v36 }
 0x1d1   : > { %v668_v11 = vmul.f32 %v1883_v54, %v656_v51 }
 0x1d2   : > { %v681_v22 = vpop.permute.xlu1 %680 }
 0x1d3   : > { %v684_v17 = vsel %vm615_vm10, %v677_v19, %v681_v22  ;;  %v686_v18 = vsel %vm615_vm10, %v681_v22, %v677_v19 }
 0x1d4   : > { %v1841_v24 = vpop.permute.xlu0 %646  ;;  %v689_v47 = vsel %vm524_vm11, %v686_v18, 0.0  ;;  %v700_v52 = vmul.f32 %v1898_v58, %v684_v17 }
 0x1d6   : > { %v1843_v27 = vpop.permute.xlu1 %650 }
 0x1d7   : > { %v655_v42 = vsel %vm558_vm8, %v1843_v27, %v1841_v24 }
 0x1d8   : > { %v551_v32 = vpop.permute.xlu0 %550 }
 0x1da   : > { %v608_v39 = vpop.permute.xlu1 %607 }
 0x1dc   : > { %v553_v44 = vpop.permute.xlu0 %552 }
 0x1de   : > { %v1873_v48 = vpop.permute.xlu1 %682 }
 0x1e0   : > { %v610_v60 = vpop.permute.xlu0 %609 }
 0x1e2   : > { %v612_v3 = vpop.permute.xlu1 %611 }
 0x1e3   : > { %v616_v7 = vsel %vm615_vm10, %v608_v39, %v612_v3  ;;  %v618_v8 = vsel %vm615_vm10, %v612_v3, %v608_v39 }
 0x1e4   : > { %v555_v14 = vpop.permute.xlu0 %554  ;;  %v624_v28 = vsel %vm1748_vm5, %v616_v7, 0.0  ;;  %v625_v53 = vsel %vm1919_vm12, %v618_v8, 0.0  ;;  %v653_v8 = vsel %vm558_vm8, %v1841_v24, %v1843_v27 }
 0x1e5   : > { %v559_v49 = vsel %vm558_vm8, %v551_v32, %v555_v14  ;;  %v561_v23 = vsel %vm558_vm8, %v555_v14, %v551_v32  ;;  %v636_v10 = vmul.f32 %v631_v62, %v624_v28  ;;  %v637_v14 = vmul.f32 %v635_v6, %v625_v53 }
 0x1e6   : > { %v567_v39 = vsel %vm1939_vm13, %v561_v23, 0.0  ;;  %v568_v43 = vsel %vm1748_vm5, %v559_v49, 0.0  ;;  %v557_v45 = vpop.permute.xlu1 %556 }
 0x1e7   : > { %v579_v19 = vmul.f32 %v574_v2, %v567_v39  ;;  %v580_v22 = vmul.f32 %v578_v4, %v568_v43  ;;  %v560_v46 = vsel %vm558_vm8, %v553_v44, %v557_v45  ;;  %v562_v32 = vsel %vm558_vm8, %v557_v45, %v553_v44 }
 0x1e8   : > { %v569_v36 = vsel %vm521_vm9, %v562_v32, 0.0  ;;  %v582_v51 = vmul.f32 %v578_v4, %v560_v46  ;;  %v718_v9 = vpop.permute.xlu0 %717  ;;  %v671_v39 = vmul.f32 %v1887_v55, %v653_v8 }
 0x1e9   : > { %v583_v3 = vadd.f32 %v579_v19, %v1733_v1  ;;  %v584_v7 = vadd.f32 %v580_v22, %v1741_v5  ;;  %v581_v44 = vmul.f32 %v574_v2, %v569_v36  ;;  %v658_v5 = vsel %vm521_vm9, %v655_v42, 0.0 }
 0x1ea   : > { %v586_v4 = vadd.f32 %v582_v51, %v1790_v30  ;;  %v614_v17 = vpop.permute.xlu1 %613 }
 0x1eb   : > { %v603_v18 = vadd.f32 %v1774_v21, %v583_v3  ;;  %v604_v49 = vadd.f32 %v1786_v26, %v584_v7  ;;  %v585_v23 = vadd.f32 %v581_v44, %v1755_v12  ;;  %v617_v1 = vsel %vm615_vm10, %v610_v60, %v614_v17 }
 0x1ec   : > { %v606_v2 = vadd.f32 %v1782_v25, %v586_v4  ;;  %v619_v24 = vsel %vm615_vm10, %v614_v17, %v610_v60  ;;  %v638_v27 = vmul.f32 %v631_v62, %v617_v1  ;;  %v679_v30 = vpop.permute.xlu0 %678  ;;  %v701_v26 = vmul.f32 %v1902_v59, %v689_v47  ;;  %v1121_v1 = vld [vmem:[#allocation7 + $0x10] ss:$0 sm:$0xff] }
 0x1ed   : > { %v640_v28 = vadd.f32 %v636_v10, %v603_v18  ;;  %v641_v53 = vadd.f32 %v637_v14, %v604_v49  ;;  %v605_v21 = vadd.f32 %v1770_v20, %v585_v23  ;;  %v627_v12 = vsel %vm524_vm11, %v619_v24, 0.0 }
 0x1ee   : > { %v639_v43 = vmul.f32 %v635_v6, %v627_v12  ;;  %v687_v25 = vsel %vm615_vm10, %v1873_v48, %v679_v30  ;;  %v722_v45 = vpop.permute.xlu1 %721  ;;  %v670_v60 = vmul.f32 %v1883_v54, %v658_v5  ;;  %v685_v20 = vsel %vm615_vm10, %v679_v30, %v1873_v48 }
 0x1ef   : > { %v642_v62 = vadd.f32 %v638_v27, %v605_v21  ;;  %v672_v19 = vadd.f32 %v668_v11, %v640_v28  ;;  %v691_v46 = vsel %vm524_vm11, %v687_v25, 0.0  ;;  %v673_v32 = vadd.f32 %v669_v13, %v641_v53  ;;  %v1122_v21 = vld [vmem:[#allocation7 + $0x18] ss:$0 sm:$0xff] }
 0x1f0   : > { %v643_v22 = vadd.f32 %v639_v43, %v606_v2  ;;  %v725_v55 = vsel %vm558_vm8, %v718_v9, %v722_v45  ;;  %v720_v6 = vpop.permute.xlu0 %719  ;;  %v727_v54 = vsel %vm558_vm8, %v722_v45, %v718_v9  ;;  %v702_v13 = vmul.f32 %v1898_v58, %v685_v20 }
 0x1f1   : > { %v674_v47 = vadd.f32 %v670_v60, %v642_v62  ;;  %v704_v36 = vadd.f32 %v700_v52, %v672_v19  ;;  %v746_v51 = vmul.f32 %v1951_v15, %v725_v55  ;;  %v705_v42 = vadd.f32 %v701_v26, %v673_v32 }
 0x1f2   : > { %v675_v11 = vadd.f32 %v671_v39, %v643_v22  ;;  %v733_v52 = vsel %vm521_vm9, %v727_v54, 0.0  ;;  %v724_v3 = vpop.permute.xlu1 %723  ;;  %v703_v9 = vmul.f32 %v1902_v59, %v691_v46  ;;  %v816_v24 = vrot.slane %v1706_v38, %v1890_v56 }
 0x1f3   : > { %v745_v7 = vmul.f32 %v1945_v37, %v733_v52  ;;  %v726_v44 = vsel %vm558_vm8, %v720_v6, %v724_v3  ;;  %v728_v8 = vsel %vm558_vm8, %v724_v3, %v720_v6  ;;  %v706_v10 = vadd.f32 %v702_v13, %v674_v47  ;;  %v1123_v52 = vld [vmem:[%s2143_s5] ss:$0 sm:$0xff] }
 0x1f4   : > { %v750_v14 = vadd.f32 %v746_v51, %v705_v42  ;;  %v735_v58 = vsel %vm2024_vm14, %v728_v8, 0.0  ;;  %v736_v4 = vsel %vm1851_vm7, %v726_v44, 0.0  ;;  %v774_v17 = vpop.permute.xlu0 %773  ;;  %v707_v18 = vadd.f32 %v703_v9, %v675_v11 }
 0x1f5   : > { %v749_v49 = vadd.f32 %v745_v7, %v704_v36  ;;  %v747_v59 = vmul.f32 %v1945_v37, %v735_v58  ;;  %v748_v23 = vmul.f32 %v1951_v15, %v736_v4  ;;  %v842_v27 = vrot.slane %v1706_v38, %v1849_v31 }
 0x1f6   : > { %v770_v5 = vadd.f32 %v1905_v61, %v750_v14  ;;  %v778_v2 = vpop.permute.xlu1 %777  ;;  %v838_v30 = vrot.slane %v1706_v38, %v1857_v41  ;;  %v822_v31 = vrot.slane %v812_v16, %v1876_v50  ;;  %v826_v16 = vrot.slane %v816_v24, %v1876_v50 }
 0x1f7   : > { %v751_v28 = vadd.f32 %v747_v59, %v706_v10  ;;  %v752_v53 = vadd.f32 %v748_v23, %v707_v18  ;;  %v769_v37 = vadd.f32 %v1893_v57, %v749_v49  ;;  %v781_v15 = vsel %vm615_vm10, %v774_v17, %v778_v2 }
 0x1f8   : > { %v783_v61 = vsel %vm615_vm10, %v778_v2, %v774_v17  ;;  %v801_v12 = vmul.f32 %v1121_v1, %v781_v15  ;;  %v776_v45 = vpop.permute.xlu0 %775  ;;  %v848_v60 = vrot.slane %v838_v30, %v1857_v41  ;;  %v852_v20 = vrot.slane %v842_v27, %v1857_v41 }
 0x1f9   : > { %v790_v56 = vsel %vm524_vm11, %v783_v61, 0.0  ;;  %v771_v26 = vadd.f32 %v1907_v63, %v751_v28  ;;  %v772_v39 = vadd.f32 %v1913_v0, %v752_v53 }
 0x1fa   : > { %v802_v43 = vmul.f32 %v1122_v21, %v790_v56  ;;  %v805_v25 = vadd.f32 %v801_v12, %v769_v37  ;;  %v780_v38 = vpop.permute.xlu1 %779 }
 0x1fb   : > { %v782_v35 = vsel %vm615_vm10, %v776_v45, %v780_v38  ;;  %v784_v62 = vsel %vm615_vm10, %v780_v38, %v776_v45 }
 0x1fc   : > { %v806_v19 = vadd.f32 %v802_v43, %v770_v5  ;;  %v791_v63 = vsel %vm1851_vm7, %v782_v35, 0.0  ;;  %v792_v0 = vsel %vm2065_vm15, %v784_v62, 0.0  ;;  %v827_v22 = vadd.f32 %v822_v31, %v805_v25 }
 0x1fd   : > { %v803_v46 = vmul.f32 %v1121_v1, %v791_v63  ;;  %v804_v50 = vmul.f32 %v1122_v21, %v792_v0 }
 0x1fe   : > { %v828_v32 = vadd.f32 %v826_v16, %v806_v19  ;;  %v853_v55 = vmul.f32 %v848_v60, %v827_v22  ;;  %vm831_vm0 = vcmp.ge.f32.partialorder %v827_v22, 0.0 }
 0x1ff   : > { %v807_v6 = vadd.f32 %v803_v46, %v771_v26  ;;  %v808_v47 = vadd.f32 %v804_v50, %v772_v39 }
 0x200   : > { %vm832_vm1 = vcmp.ge.f32.partialorder %v828_v32, 0.0  ;;  %v854_v29 = vmul.f32 %v852_v20, %v828_v32  ;;  %v857_v51 = vsel %vm831_vm0, %v827_v22, %v853_v55 }
 0x201   : > { %v830_v36 = vadd.f32 %v826_v16, %v808_v47  ;;  %v829_v54 = vadd.f32 %v822_v31, %v807_v6 }
 0x202   : > { %v858_v41 = vsel %vm832_vm1, %v828_v32, %v854_v29 }
 0x203   : > { %964 = vmatprep.mubr.f32.mxu1 %v858_v41  ;;  %vm834_vm2 = vcmp.ge.f32.partialorder %v830_v36, 0.0  ;;  %v856_v40 = vmul.f32 %v852_v20, %v830_v36  ;;  %vm833_vm3 = vcmp.ge.f32.partialorder %v829_v54, 0.0  ;;  %v855_v48 = vmul.f32 %v848_v60, %v829_v54 }
 0x204   : > { %965 = vmatmul.mubr.f32.vlgmr.msra.gmra.mxu1 %v857_v51 }
 0x205   : > { %v860_v11 = vsel %vm834_vm2, %v830_v36, %v856_v40  ;;  %v859_v13 = vsel %vm833_vm3, %v829_v54, %v855_v48 }
 0x206   : > { %969 = vmatprep.mubr.f32.mxu1 %v860_v11 }
 0x208   : > { %970 = vmatmul.mubr.f32.gmra.mxu1 %v859_v13 }
 0x2c4   : > { %v1163_v42 = vpop.f32.mrf.mxu1 }
 0x2c6   : > { %v1164_v3 = vpop.f32.mrf.mxu1 }
 0x2c7   : > { %v1165_v9 = vadd.f32 %v1164_v3, %v1163_v42 }
 0x2c8   : > { %v1166_v7 = vpop.f32.mrf.mxu1 }
 0x2c9   : > { %v967_v44 = vadd.f32 %v1165_v9, %v1123_v52 }
 0x2ca   : > { %v1167_v8 = vpop.f32.mrf.mxu1 }
 0x2cb   : > { %v975_v10 = vadd.f32 %v967_v44, %v1692_v33  ;;  %v1168_v14 = vadd.f32 %v1167_v8, %v1166_v7 }
 0x2cd   : > { %977 = vst [vmem:[%s325_s17] sm:$0xff] %v975_v10  ;;  %v972_v58 = vadd.f32 %v1168_v14, %v1123_v52 }
 0x2cf   : > { %v976_v4 = vadd.f32 %v972_v58, %v1697_v34 }
 0x2d1   : > { %978 = vst [vmem:[%s325_s17 + $0x8] sm:$0xff] %v976_v4 }
 0x2d2   : > { %1410 = shalt.err (!%p1407_p10)
}
 0x2d3   : > { %s1411_s27 = scalar_lea.hbm %s2094_s18, 256  ;;  %s1415_s14 = scalar_lea.hbm %s2144_s6, 512 }
 0x2d4   : > { %p1412_p3 = scmp.ne.s32.totalorder %s2094_s18, %s1411_s27  ;;  %p1416_p11 = scmp.lt.s32.totalorder %s2094_s18, %s2144_s6 }
 0x2d5   : > { %p1417_p4 = scmp.lt.s32.totalorder %s1415_s14, %s1411_s27 }
 0x2d6   : > { %p1413_p8 = pnand %p1412_p3, %p2178_p1 }
 0x2d7   : > { %p1418_p7 = por %p1417_p4, %p1416_p11 }
 0x2d8   : > { %p1414_p6 = pneg %p1413_p8 }
 0x2da   : > { %p1419_p12 = pnand %p1418_p7, %p1414_p6 }
 0x2dc   : > { %1422 = shalt.err (!%p1419_p12)
}
 0x2dd   : > { %s1484_s20 = smov 128   ;;  %s1485_s30 = smov 8  }
 0x2de   : > { %1187 = dma.vmem_to_hbm [thread:$0]  (%p2178_p1), %s2089_s9, 256, %s2094_s18, %s980_s7, %s1484_s20, %s1484_s20, %s1485_s30  }
 0x2df PF: > { %s1008_s12 = sand.u32 1, %s1457_s21   ;;  %p2179_p9 = scmp.ne.s32.totalorder %s2152_s28, 0 }
 0x2e0   : > { %p2180_p13 = scmp.ge.s32.totalorder %s1469_s24, 2  ;;  %s1009_s25 = scalar_lea.sflag [#allocation4], %s1008_s12 }
 0x2e2   : > { %p1207_p2 = pnand %p2180_p13, %p2179_p9 }
 0x2e4   : > { %p1208_p0 = pneg %p1207_p2 }
 0x2e6   : > { %1452 = dma.done.wait (%p1208_p0), %s1009_s25, 256  }
 0x2e7   : > { %1454 = vsyncadd (%p1208_p0), %s1009_s25, 4294967040  ;;  %p21_p5 = scmp.ge.s32.totalorder %s1612_s16, 4   ;;  %s2181_s21 = smov %s1461_s22 }
 0x2e8   : > { %s2182_s22 = smov %s1465_s23  ;;  %s2183_s23 = smov %s1621_s19 }
 0x2e9   : > { %s2184_s24 = smov %s1612_s16  ;;  %23 = sbr.rel (!%p21_p5) target bundleno = 7 (0x7), region = 105 }
 0x2ee   :  { %1014 = vsyncpa [#allocation3], 1 }
 0x2ef   :  { %1016 = vsyncpa [#allocation3 + $0x1], 1 }
 0x2f0   :  { %1017 = vsyncpa [#allocation6], 1 }
 0x2f1   :  { %1018 = vsyncpa [#allocation9], 1 }
 0x2f2   :  { %1019 = vsyncpa [#allocation4], 1 }
 0x2f3   :  { %1021 = vsyncpa [#allocation4 + $0x1], 1 }

</bundles_post_ra>
